<compile_context>
chip_gen: v7x
topology: tpu7x:2x2x1
jax: 0.10.0
libtpu: 0.0.40
codegen_flags: <defaults>
</compile_context>

<pallas_src>
import math

import jax
import jax.numpy as jnp
from jax.experimental import pallas as pl
from jax.experimental.pallas import tpu as pltpu

LANE = 128
SUBLANE = 16            # bf16 sublane packing: keep batch tiles a multiple of 16


def _cdiv(a, b):
    return -(-a // b)


def _round_up(x, m):
    return ((x + m - 1) // m) * m


def _vmem_capacity_bytes():
    try:
        return int(pltpu.get_tpu_info().vmem_capacity_bytes)
    except Exception:
        return 64 << 20             # v7x-sized fallback: safe on every generation


def _vmem_limit_bytes(tb, dim, half, c_pad, *, weight_buffers):
    d2 = 2 * dim
    # resident weights (bf16) + biases (f32), multiplied by their buffer count
    weight_bytes = weight_buffers * ((d2 * dim + dim * half + half * c_pad) * 2
                                     + (dim + half + c_pad) * 4)
    # streaming activation tiles (bf16 in & out), double-buffered by the pipeline
    io_bytes = 2 * (tb * d2 * 2 + tb * c_pad * 2)
    # in-kernel temporaries: z1/h1 f32 + h1 bf16 copy, z2/h2 f32 + bf16 copy, z3 f32
    tmp_bytes = tb * (dim * 10 + half * 10 + c_pad * 4)
    budget = weight_bytes + io_bytes + tmp_bytes + (4 << 20)       # Mosaic headroom
    cap = int(0.75 * _vmem_capacity_bytes())   # 128 MiB on v5e/v6e, 64 MiB on v7x
    return int(min(max(budget, 16 << 20), cap))


def _batch_tiling(B, batch_tile):
    """Pick (tile_rows, padded_batch): <= batch_tile rows per tile, small ragged-tail
    padding, and >= 2 grid steps when possible so both v7x TensorCores get work."""
    n_tiles = max(_cdiv(B, batch_tile), 1)
    if n_tiles < 2 and B > SUBLANE:
        n_tiles = 2                       # let megacore shard the "parallel" axis
    tb = _round_up(_cdiv(B, n_tiles), SUBLANE)
    b_pad = _round_up(B, tb)
    return tb, b_pad


def mlp_kernel(emb_ref, w1_ref, b1_ref, w2_ref, b2_ref, w3_ref, b3_ref, out_ref):
    # Layer 1: single K=2*dim MXU push (inputs pre-concatenated + bf16 in the wrapper),
    # f32 accumulation, f32 bias-add + tanh (VPU/EUP).
    z1 = jnp.dot(emb_ref[...], w1_ref[...], preferred_element_type=jnp.float32)
    h1 = jnp.tanh(z1 + b1_ref[...])
    # Layer 2
    z2 = jnp.dot(h1.astype(jnp.bfloat16), w2_ref[...],
                 preferred_element_type=jnp.float32)
    h2 = jnp.tanh(z2 + b2_ref[...])
    # Layer 3 (classes lane-padded to 128 -> unmasked, lane-dense bf16 store)
    z3 = jnp.dot(h2.astype(jnp.bfloat16), w3_ref[...],
                 preferred_element_type=jnp.float32)
    out_ref[...] = (z3 + b3_ref[...]).astype(out_ref.dtype)


def mlp_forward(image_emb, text_emb, params, *, batch_tile=256):
    """Fused MLP head: all three matmuls + tanh + bias adds in one Pallas kernel,
    batch-tiled and pipelined, weights resident (single-buffered) in VMEM."""
    B, dim = image_emb.shape
    half = dim // 2
    d2 = 2 * dim
    num_classes = params["w3"].shape[1]
    c_pad = _round_up(num_classes, LANE)            # lane-dense output

    tb, b_pad = _batch_tiling(B, batch_tile)
    grid = (b_pad // tb,)

    # Wrapper-side concat + batch pad + bf16 cast: one fused XLA pass, so the concat
    # is free given the cast already copies the activations. Halves activation HBM
    # traffic into the kernel vs. streaming f32.
    emb = jnp.concatenate([image_emb, text_emb], axis=1)
    emb = jnp.pad(emb, ((0, b_pad - B), (0, 0))).astype(jnp.bfloat16)

    # bf16 weights (MXU-native); f32 biases. W3/b3 lane-padded to c_pad.
    w1 = params["w1"].astype(jnp.bfloat16)
    w2 = params["w2"].astype(jnp.bfloat16)
    w3 = jnp.pad(params["w3"], ((0, 0), (0, c_pad - num_classes))).astype(jnp.bfloat16)
    b1 = params["b1"].astype(jnp.float32)
    b2 = params["b2"].astype(jnp.float32)
    b3 = jnp.pad(params["b3"], ((0, 0), (0, c_pad - num_classes))).astype(jnp.float32)

    flops = 2 * b_pad * (d2 * dim + dim * half + half * c_pad)
    transcendentals = b_pad * (dim + half)
    bytes_accessed = ((b_pad * d2 + b_pad * c_pad) * 2              # bf16 activations
                      + (d2 * dim + dim * half + half * c_pad) * 2  # bf16 weights
                      + (dim + half + c_pad) * 4)                   # f32 biases

    def batch_spec(shape):
        return pl.BlockSpec(shape, lambda i: (i, 0))

    def build(single_buffer_weights):
        if single_buffer_weights:
            # Constant index_map -> no per-step DMA to hide; single-buffering halves
            # the resident-weight VMEM footprint (decisive on v7x's 64 MiB).
            def resident_spec(shape):
                return pl.BlockSpec(shape, lambda i: (0, 0),
                                    pipeline_mode=pl.Buffered(1))
        else:
            def resident_spec(shape):
                return pl.BlockSpec(shape, lambda i: (0, 0))

        weight_buffers = 1 if single_buffer_weights else 2
        return pl.pallas_call(
            mlp_kernel,
            out_shape=jax.ShapeDtypeStruct((b_pad, c_pad), jnp.bfloat16),
            grid=grid,
            in_specs=[
                batch_spec((tb, d2)),           # emb tile (streams, double-buffered)
                resident_spec((d2, dim)),       # W1
                resident_spec((1, dim)),        # b1
                resident_spec((dim, half)),     # W2
                resident_spec((1, half)),       # b2
                resident_spec((half, c_pad)),   # W3 (lane-padded)
                resident_spec((1, c_pad)),      # b3 (lane-padded)
            ],
            out_specs=batch_spec((tb, c_pad)),
            compiler_params=pltpu.CompilerParams(
                dimension_semantics=("parallel",),
                vmem_limit_bytes=_vmem_limit_bytes(
                    tb, dim, half, c_pad, weight_buffers=weight_buffers),
            ),
            cost_estimate=pl.CostEstimate(
                flops=flops,
                transcendentals=transcendentals,
                bytes_accessed=bytes_accessed,
            ),
        )

    try:
        out_pad = build(True)(emb, w1, b1, w2, b2, w3, b3)
    except Exception:
        # Fallback for jax versions that reject Buffered(1) on constant-index specs:
        # identical kernel, default double-buffering.
        out_pad = build(False)(emb, w1, b1, w2, b2, w3, b3)

    return out_pad[:B, :num_classes].astype(jnp.float32)


def init_params(key, dim, num_classes):
    """Matches the PyTorch module:
       - weights: xavier_normal_ (std = sqrt(2 / (fan_in + fan_out)))
       - biases:  nn.Linear default U(-1/sqrt(fan_in), 1/sqrt(fan_in))
       Weights stored as [in_features, out_features] (transposed vs. PyTorch)."""
    dims = [(2 * dim, dim), (dim, dim // 2), (dim // 2, num_classes)]
    params = {}
    keys = jax.random.split(key, 2 * len(dims))
    for i, (fan_in, fan_out) in enumerate(dims):
        wk, bk = keys[2 * i], keys[2 * i + 1]
        std = math.sqrt(2.0 / (fan_in + fan_out))
        w = std * jax.random.normal(wk, (fan_in, fan_out), dtype=jnp.float32)
        bound = 1.0 / math.sqrt(fan_in)
        b = jax.random.uniform(bk, (1, fan_out), dtype=jnp.float32,
                               minval=-bound, maxval=bound)
        params[f"w{i + 1}"] = w
        params[f"b{i + 1}"] = b
    return params


def mlp_reference(image_emb, text_emb, params):
    """Plain-JAX f32 reference of the module semantics (for sanity checking)."""
    emb = jnp.concatenate([image_emb, text_emb], axis=1)
    h1 = jnp.tanh(emb @ params["w1"] + params["b1"])
    h2 = jnp.tanh(h1 @ params["w2"] + params["b2"])
    return h2 @ params["w3"] + params["b3"]


if __name__ == "__main__":
    B = 2
    dim = 32
    num_classes = 4

    key = jax.random.PRNGKey(0)
    k_img, k_txt, k_par = jax.random.split(key, 3)

    image_emb = jax.random.normal(k_img, (B, dim), dtype=jnp.float32)
    text_emb = jax.random.normal(k_txt, (B, dim), dtype=jnp.float32)
    params = init_params(k_par, dim, num_classes)

    logits = mlp_forward(image_emb, text_emb, params)
    logits = jax.block_until_ready(logits)

    ref = mlp_reference(image_emb, text_emb, params)
    assert logits.shape == (B, num_classes)
    # bf16 matmul operands / bf16 logits store (f32 accumulate & tanh) => loose tolerance.
    assert jnp.allclose(logits, ref, atol=1e-1, rtol=1e-1), \
        float(jnp.max(jnp.abs(logits - ref)))

    print("KERNEL_OK")
</pallas_src>

<mosaic_0001>
module attributes {stable_mosaic.version = 11 : i64} {
  func.func @mlp_kernel(%arg0: i32, %arg1: memref<16x64xbf16, #tpu.memory_space<vmem>>, %arg2: memref<64x32xbf16, #tpu.memory_space<vmem>>, %arg3: memref<1x32xf32, #tpu.memory_space<vmem>>, %arg4: memref<32x16xbf16, #tpu.memory_space<vmem>>, %arg5: memref<1x16xf32, #tpu.memory_space<vmem>>, %arg6: memref<16x128xbf16, #tpu.memory_space<vmem>>, %arg7: memref<1x128xf32, #tpu.memory_space<vmem>>, %arg8: memref<16x128xbf16, #tpu.memory_space<vmem>>) attributes {dimension_semantics = [#tpu.dimension_semantics<parallel>], iteration_bounds = array<i64: 1>, scalar_prefetch = 0 : i64, scratch_operands = 0 : i64, tpu.core_type = #tpu.core_type<tc>, window_params = [{transform_indices = @transform_0, window_bounds = array<i64: 16, 64>}, {pipeline_mode = #tpu.pipeline_mode<synchronous>, transform_indices = @transform_1, window_bounds = array<i64: 64, 32>}, {pipeline_mode = #tpu.pipeline_mode<synchronous>, transform_indices = @transform_2, window_bounds = array<i64: 1, 32>}, {pipeline_mode = #tpu.pipeline_mode<synchronous>, transform_indices = @transform_3, window_bounds = array<i64: 32, 16>}, {pipeline_mode = #tpu.pipeline_mode<synchronous>, transform_indices = @transform_4, window_bounds = array<i64: 1, 16>}, {pipeline_mode = #tpu.pipeline_mode<synchronous>, transform_indices = @transform_5, window_bounds = array<i64: 16, 128>}, {pipeline_mode = #tpu.pipeline_mode<synchronous>, transform_indices = @transform_6, window_bounds = array<i64: 1, 128>}, {transform_indices = @transform_7, window_bounds = array<i64: 16, 128>}]} {
    %c0 = arith.constant 0 : index
    %c0_0 = arith.constant 0 : index
    %0 = vector.load %arg1[%c0, %c0_0] : memref<16x64xbf16, #tpu.memory_space<vmem>>, vector<16x64xbf16>
    %c0_1 = arith.constant 0 : index
    %c0_2 = arith.constant 0 : index
    %1 = vector.load %arg2[%c0_1, %c0_2] : memref<64x32xbf16, #tpu.memory_space<vmem>>, vector<64x32xbf16>
    %cst = arith.constant dense<0.000000e+00> : vector<16x32xf32>
    %2 = tpu.matmul %0, %1, %cst {dimension_numbers = #tpu.dot_dimension_numbers<[1], [0], [0], [1], [0, 0, 1, 1], [], []>} : vector<16x64xbf16>, vector<64x32xbf16>, vector<16x32xf32> -> vector<16x32xf32>
    %c0_3 = arith.constant 0 : index
    %c0_4 = arith.constant 0 : index
    %3 = vector.load %arg3[%c0_3, %c0_4] : memref<1x32xf32, #tpu.memory_space<vmem>>, vector<1x32xf32>
    %4 = vector.broadcast %3 : vector<1x32xf32> to vector<16x32xf32>
    %5 = arith.addf %2, %4 : vector<16x32xf32>
    %6 = math.tanh %5 : vector<16x32xf32>
    %7 = arith.truncf %6 : vector<16x32xf32> to vector<16x32xbf16>
    %c0_5 = arith.constant 0 : index
    %c0_6 = arith.constant 0 : index
    %8 = vector.load %arg4[%c0_5, %c0_6] : memref<32x16xbf16, #tpu.memory_space<vmem>>, vector<32x16xbf16>
    %cst_7 = arith.constant dense<0.000000e+00> : vector<16x16xf32>
    %9 = tpu.matmul %7, %8, %cst_7 {dimension_numbers = #tpu.dot_dimension_numbers<[1], [0], [0], [1], [0, 0, 1, 1], [], []>} : vector<16x32xbf16>, vector<32x16xbf16>, vector<16x16xf32> -> vector<16x16xf32>
    %c0_8 = arith.constant 0 : index
    %c0_9 = arith.constant 0 : index
    %10 = vector.load %arg5[%c0_8, %c0_9] : memref<1x16xf32, #tpu.memory_space<vmem>>, vector<1x16xf32>
    %11 = vector.broadcast %10 : vector<1x16xf32> to vector<16x16xf32>
    %12 = arith.addf %9, %11 : vector<16x16xf32>
    %13 = math.tanh %12 : vector<16x16xf32>
    %14 = arith.truncf %13 : vector<16x16xf32> to vector<16x16xbf16>
    %c0_10 = arith.constant 0 : index
    %c0_11 = arith.constant 0 : index
    %15 = vector.load %arg6[%c0_10, %c0_11] : memref<16x128xbf16, #tpu.memory_space<vmem>>, vector<16x128xbf16>
    %cst_12 = arith.constant dense<0.000000e+00> : vector<16x128xf32>
    %16 = tpu.matmul %14, %15, %cst_12 {dimension_numbers = #tpu.dot_dimension_numbers<[1], [0], [0], [1], [0, 0, 1, 1], [], []>} : vector<16x16xbf16>, vector<16x128xbf16>, vector<16x128xf32> -> vector<16x128xf32>
    %c0_13 = arith.constant 0 : index
    %c0_14 = arith.constant 0 : index
    %17 = vector.load %arg7[%c0_13, %c0_14] : memref<1x128xf32, #tpu.memory_space<vmem>>, vector<1x128xf32>
    %18 = vector.broadcast %17 : vector<1x128xf32> to vector<16x128xf32>
    %19 = arith.addf %16, %18 : vector<16x128xf32>
    %20 = arith.truncf %19 : vector<16x128xf32> to vector<16x128xbf16>
    %c0_15 = arith.constant 0 : index
    %c0_16 = arith.constant 0 : index
    %21 = vector.load %arg8[%c0_15, %c0_16] : memref<16x128xbf16, #tpu.memory_space<vmem>>, vector<16x128xbf16>
    tpu.vector_store %arg8[%c0_15, %c0_16], %20 {strides = array<i32>} : memref<16x128xbf16, #tpu.memory_space<vmem>>, vector<16x128xbf16>,
    return
  }
  func.func @transform_0(%arg0: i32) -> (i32, i32) {
    %c0_i32 = arith.constant 0 : i32
    %c0_i32_0 = arith.constant 0 : i32
    return %arg0, %c0_i32 : i32, i32
  }
  func.func @transform_1(%arg0: i32) -> (i32, i32) {
    %c0_i32 = arith.constant 0 : i32
    %c0_i32_0 = arith.constant 0 : i32
    %c0_i32_1 = arith.constant 0 : i32
    return %c0_i32, %c0_i32_0 : i32, i32
  }
  func.func @transform_2(%arg0: i32) -> (i32, i32) {
    %c0_i32 = arith.constant 0 : i32
    %c0_i32_0 = arith.constant 0 : i32
    %c0_i32_1 = arith.constant 0 : i32
    return %c0_i32, %c0_i32_0 : i32, i32
  }
  func.func @transform_3(%arg0: i32) -> (i32, i32) {
    %c0_i32 = arith.constant 0 : i32
    %c0_i32_0 = arith.constant 0 : i32
    %c0_i32_1 = arith.constant 0 : i32
    return %c0_i32, %c0_i32_0 : i32, i32
  }
  func.func @transform_4(%arg0: i32) -> (i32, i32) {
    %c0_i32 = arith.constant 0 : i32
    %c0_i32_0 = arith.constant 0 : i32
    %c0_i32_1 = arith.constant 0 : i32
    return %c0_i32, %c0_i32_0 : i32, i32
  }
  func.func @transform_5(%arg0: i32) -> (i32, i32) {
    %c0_i32 = arith.constant 0 : i32
    %c0_i32_0 = arith.constant 0 : i32
    %c0_i32_1 = arith.constant 0 : i32
    return %c0_i32, %c0_i32_0 : i32, i32
  }
  func.func @transform_6(%arg0: i32) -> (i32, i32) {
    %c0_i32 = arith.constant 0 : i32
    %c0_i32_0 = arith.constant 0 : i32
    %c0_i32_1 = arith.constant 0 : i32
    return %c0_i32, %c0_i32_0 : i32, i32
  }
  func.func @transform_7(%arg0: i32) -> (i32, i32) {
    %c0_i32 = arith.constant 0 : i32
    %c0_i32_0 = arith.constant 0 : i32
    return %arg0, %c0_i32 : i32, i32
  }
}

module attributes {stable_mosaic.version = 11 : i64} {
  func.func @mlp_kernel(%arg0: i32, %arg1: memref<16x64xbf16, #tpu.memory_space<vmem>>, %arg2: memref<64x32xbf16, #tpu.memory_space<vmem>>, %arg3: memref<1x32xf32, #tpu.memory_space<vmem>>, %arg4: memref<32x16xbf16, #tpu.memory_space<vmem>>, %arg5: memref<1x16xf32, #tpu.memory_space<vmem>>, %arg6: memref<16x128xbf16, #tpu.memory_space<vmem>>, %arg7: memref<1x128xf32, #tpu.memory_space<vmem>>, %arg8: memref<16x128xbf16, #tpu.memory_space<vmem>>) attributes {dimension_semantics = [#tpu.dimension_semantics<parallel>], iteration_bounds = array<i64: 1>, scalar_prefetch = 0 : i64, scratch_operands = 0 : i64, tpu.core_type = #tpu.core_type<tc>, window_params = [{transform_indices = @transform_0, window_bounds = array<i64: 16, 64>}, {pipeline_mode = #tpu.pipeline_mode<synchronous>, transform_indices = @transform_1, window_bounds = array<i64: 64, 32>}, {pipeline_mode = #tpu.pipeline_mode<synchronous>, transform_indices = @transform_2, window_bounds = array<i64: 1, 32>}, {pipeline_mode = #tpu.pipeline_mode<synchronous>, transform_indices = @transform_3, window_bounds = array<i64: 32, 16>}, {pipeline_mode = #tpu.pipeline_mode<synchronous>, transform_indices = @transform_4, window_bounds = array<i64: 1, 16>}, {pipeline_mode = #tpu.pipeline_mode<synchronous>, transform_indices = @transform_5, window_bounds = array<i64: 16, 128>}, {pipeline_mode = #tpu.pipeline_mode<synchronous>, transform_indices = @transform_6, window_bounds = array<i64: 1, 128>}, {transform_indices = @transform_7, window_bounds = array<i64: 16, 128>}]} {
    %c0 = arith.constant 0 : index
    %c0_0 = arith.constant 0 : index
    %0 = vector.load %arg1[%c0, %c0_0] : memref<16x64xbf16, #tpu.memory_space<vmem>>, vector<16x64xbf16>
    %c0_1 = arith.constant 0 : index
    %c0_2 = arith.constant 0 : index
    %1 = vector.load %arg2[%c0_1, %c0_2] : memref<64x32xbf16, #tpu.memory_space<vmem>>, vector<64x32xbf16>
    %cst = arith.constant dense<0.000000e+00> : vector<16x32xf32>
    %2 = tpu.matmul %0, %1, %cst {dimension_numbers = #tpu.dot_dimension_numbers<[1], [0], [0], [1], [0, 0, 1, 1], [], []>} : vector<16x64xbf16>, vector<64x32xbf16>, vector<16x32xf32> -> vector<16x32xf32>
    %c0_3 = arith.constant 0 : index
    %c0_4 = arith.constant 0 : index
    %3 = vector.load %arg3[%c0_3, %c0_4] : memref<1x32xf32, #tpu.memory_space<vmem>>, vector<1x32xf32>
    %4 = vector.broadcast %3 : vector<1x32xf32> to vector<16x32xf32>
    %5 = arith.addf %2, %4 : vector<16x32xf32>
    %6 = math.tanh %5 : vector<16x32xf32>
    %7 = arith.truncf %6 : vector<16x32xf32> to vector<16x32xbf16>
    %c0_5 = arith.constant 0 : index
    %c0_6 = arith.constant 0 : index
    %8 = vector.load %arg4[%c0_5, %c0_6] : memref<32x16xbf16, #tpu.memory_space<vmem>>, vector<32x16xbf16>
    %cst_7 = arith.constant dense<0.000000e+00> : vector<16x16xf32>
    %9 = tpu.matmul %7, %8, %cst_7 {dimension_numbers = #tpu.dot_dimension_numbers<[1], [0], [0], [1], [0, 0, 1, 1], [], []>} : vector<16x32xbf16>, vector<32x16xbf16>, vector<16x16xf32> -> vector<16x16xf32>
    %c0_8 = arith.constant 0 : index
    %c0_9 = arith.constant 0 : index
    %10 = vector.load %arg5[%c0_8, %c0_9] : memref<1x16xf32, #tpu.memory_space<vmem>>, vector<1x16xf32>
    %11 = vector.broadcast %10 : vector<1x16xf32> to vector<16x16xf32>
    %12 = arith.addf %9, %11 : vector<16x16xf32>
    %13 = math.tanh %12 : vector<16x16xf32>
    %14 = arith.truncf %13 : vector<16x16xf32> to vector<16x16xbf16>
    %c0_10 = arith.constant 0 : index
    %c0_11 = arith.constant 0 : index
    %15 = vector.load %arg6[%c0_10, %c0_11] : memref<16x128xbf16, #tpu.memory_space<vmem>>, vector<16x128xbf16>
    %cst_12 = arith.constant dense<0.000000e+00> : vector<16x128xf32>
    %16 = tpu.matmul %14, %15, %cst_12 {dimension_numbers = #tpu.dot_dimension_numbers<[1], [0], [0], [1], [0, 0, 1, 1], [], []>} : vector<16x16xbf16>, vector<16x128xbf16>, vector<16x128xf32> -> vector<16x128xf32>
    %c0_13 = arith.constant 0 : index
    %c0_14 = arith.constant 0 : index
    %17 = vector.load %arg7[%c0_13, %c0_14] : memref<1x128xf32, #tpu.memory_space<vmem>>, vector<1x128xf32>
    %18 = vector.broadcast %17 : vector<1x128xf32> to vector<16x128xf32>
    %19 = arith.addf %16, %18 : vector<16x128xf32>
    %20 = arith.truncf %19 : vector<16x128xf32> to vector<16x128xbf16>
    %c0_15 = arith.constant 0 : index
    %c0_16 = arith.constant 0 : index
    %21 = vector.load %arg8[%c0_15, %c0_16] : memref<16x128xbf16, #tpu.memory_space<vmem>>, vector<16x128xbf16>
    tpu.vector_store %arg8[%c0_15, %c0_16], %20 {strides = array<i32>} : memref<16x128xbf16, #tpu.memory_space<vmem>>, vector<16x128xbf16>,
    return
  }
  func.func @transform_0(%arg0: i32) -> (i32, i32) {
    %c0_i32 = arith.constant 0 : i32
    %c0_i32_0 = arith.constant 0 : i32
    return %arg0, %c0_i32 : i32, i32
  }
  func.func @transform_1(%arg0: i32) -> (i32, i32) {
    %c0_i32 = arith.constant 0 : i32
    %c0_i32_0 = arith.constant 0 : i32
    %c0_i32_1 = arith.constant 0 : i32
    return %c0_i32, %c0_i32_0 : i32, i32
  }
  func.func @transform_2(%arg0: i32) -> (i32, i32) {
    %c0_i32 = arith.constant 0 : i32
    %c0_i32_0 = arith.constant 0 : i32
    %c0_i32_1 = arith.constant 0 : i32
    return %c0_i32, %c0_i32_0 : i32, i32
  }
  func.func @transform_3(%arg0: i32) -> (i32, i32) {
    %c0_i32 = arith.constant 0 : i32
    %c0_i32_0 = arith.constant 0 : i32
    %c0_i32_1 = arith.constant 0 : i32
    return %c0_i32, %c0_i32_0 : i32, i32
  }
  func.func @transform_4(%arg0: i32) -> (i32, i32) {
    %c0_i32 = arith.constant 0 : i32
    %c0_i32_0 = arith.constant 0 : i32
    %c0_i32_1 = arith.constant 0 : i32
    return %c0_i32, %c0_i32_0 : i32, i32
  }
  func.func @transform_5(%arg0: i32) -> (i32, i32) {
    %c0_i32 = arith.constant 0 : i32
    %c0_i32_0 = arith.constant 0 : i32
    %c0_i32_1 = arith.constant 0 : i32
    return %c0_i32, %c0_i32_0 : i32, i32
  }
  func.func @transform_6(%arg0: i32) -> (i32, i32) {
    %c0_i32 = arith.constant 0 : i32
    %c0_i32_0 = arith.constant 0 : i32
    %c0_i32_1 = arith.constant 0 : i32
    return %c0_i32, %c0_i32_0 : i32, i32
  }
  func.func @transform_7(%arg0: i32) -> (i32, i32) {
    %c0_i32 = arith.constant 0 : i32
    %c0_i32_0 = arith.constant 0 : i32
    return %arg0, %c0_i32 : i32, i32
  }
}

</mosaic_0001>

<bundles_post_ra>
// kernel: tpu_custom_call.1
= control target key start
LH: loop header
LB: loop body
LE: loop exit
PB: predicated region body
PF: predicated region fallthrough
CT: control target
= control target key end

     0   :  { %v383_v1 = vmov 0.0   ;;  %vm384_vm0 = vmmov 0   ;;  %s476_s0 = inlined_call_operand.vmem [shape: bf16[16,64], index: 0, kind: input, shape index: {}]   ;;  %s477_s1 = inlined_call_operand.vmem [shape: bf16[64,32], index: 1, kind: input, shape index: {}]   ;;  %s478_s2 = inlined_call_operand.vmem [shape: f32[1,32], index: 2, kind: input, shape index: {}]   ;;  %s479_s3 = inlined_call_operand.vmem [shape: bf16[32,16], index: 3, kind: input, shape index: {}]   ;;  %s480_s4 = inlined_call_operand.vmem [shape: f32[1,16], index: 4, kind: input, shape index: {}]   ;;  %s481_s5 = inlined_call_operand.vmem [shape: bf16[16,128], index: 5, kind: input, shape index: {}]   ;;  %s482_s6 = inlined_call_operand.vmem [shape: f32[1,128], index: 6, kind: input, shape index: {}]   ;;  %s483_s7 = inlined_call_operand.hbm [shape: bf16[16,128], index: 7, kind: output, shape index: {}]  }
   0x1   :  { %v343_v0 = vld [vmem:[%s477_s1] sm:$0xff]   ;;  %312 = vmatprep.subr.bf16.mxu0 %v383_v1  ;;  %324 = vmatprep.subr.bf16.mxu1 %v383_v1  ;;  %v344_v2 = vld [vmem:[%s477_s1 + $0x8] sm:$0xff]   ;;  %v345_v3 = vld [vmem:[%s477_s1 + $0x10] sm:$0xff]  }
   0x2   :  { %313 = vmatpush3.bf16.msra.mxu0 %v343_v0  ;;  %320 = vmatprep.mubr.msk.bf16.mxu0 %vm384_vm0, %v383_v1 }
   0x3   :  { %314 = vmatprep.subr.bf16.mxu0 %v383_v1  ;;  %328 = vmatprep.mubr.msk.bf16.mxu1 %vm384_vm0, %v383_v1 }
   0x6   :  { %315 = vmatpush3.bf16.msra.mxu0 %v344_v2 }
   0x7   :  { %316 = vmatprep.subr.bf16.mxu0 %v383_v1 }
   0x8   :  { %12 = vsyncpa [#allocation3], 0  ;;  %v346_v4 = vld [vmem:[%s477_s1 + $0x18] sm:$0xff]   ;;  %v347_v5 = vld [vmem:[%s476_s0] sm:$0xff]   ;;  %vm74_vm1 = vcmask 523264   ;;  %vm145_vm2 = vcmask 261120  }
   0x9   :  { %v348_v6 = vld [vmem:[%s479_s3] sm:$0xff]   ;;  %v349_v7 = vld [vmem:[%s479_s3 + $0x8] sm:$0xff]   ;;  %vm208_vm3 = vcmask 130048  }
   0xa   :  { %317 = vmatpush3.bf16.msra.mxu0 %v345_v3  ;;  %325 = vmatpush3.bf16.msra.mxu1 %v348_v6  ;;  %v279_v8 = vld [vmem:[%s478_s2] ss:$0 sm:$0xff] }
   0xb   :  { %318 = vmatprep.subr.bf16.mxu0 %v383_v1  ;;  %326 = vmatprep.subr.bf16.mxu1 %v383_v1  ;;  %v350_v18 = vld [vmem:[%s481_s5] sm:$0xff]  }
   0xc   :  { %v286_v19 = vld [vmem:[%s480_s4] ss:$0 sm:$0xff]  ;;  %s385_s4 = smov [#allocation2]  }
   0xd   :  { %v290_v29 = vld [vmem:[%s482_s6] ss:$0 sm:$0xff]  ;;  %s268_s18 = sshll.u32 %s385_s4, 4  ;;  %s269_s18 = int_to_ptr.vmem [resolvable:$true] %s268_s18 }
   0xe   :  { %319 = vmatpush3.bf16.msra.mxu0 %v346_v4  ;;  %327 = vmatpush3.bf16.msra.mxu1 %v349_v7  ;;  %s359_s19 = scalar_lea.vmem %s269_s18, 128  ;;  %p364_p1 = scmp.lt.s32.totalorder %s269_s18, %s269_s18 }
   0xf   :  { %332 = vmatprep.subr.bf16.mxu1 %v383_v1  ;;  %p360_p0 = scmp.ne.s32.totalorder %s269_s18, %s359_s19  ;;  %p365_p2 = scmp.lt.s32.totalorder %s359_s19, %s359_s19 }
  0x11   :  { %321 = vmatmul.mubr.msk.bf16.vlgmr.msra.gmra.mrb[0].mxu0 %vm74_vm1, %v347_v5  ;;  %p366_p3 = por %p365_p2, %p364_p1 }
  0x13   :  { %p367_p4 = pnand %p366_p3, %p360_p0 }
  0xe4   :  { %v112_v9 = vpop.f32.mrb[0].mxu0 }
  0xe5   :  { %v113_v10 = vadd.f32 %v279_v8, %v112_v9  ;;  %v322_v11 = vpop.f32.mrb[1].mxu0 }
  0xe6   :  { %v115_v12 = vpop.f32.mrb[2].mxu0 }
  0xe7   :  { %v116_v13 = vadd.f32 %v279_v8, %v115_v12  ;;  %v323_v14 = vpop.f32.mrb[3].mxu0  ;;  %351 = vtanh.f32 %v113_v10 }
  0xe9   :  { %353 = vtanh.f32 %v116_v13 }
  0xf1   :  { %v352_v15 = vpop.eup %351 }
  0xf3   :  { %v354_v16 = vpop.eup %353 }
  0xf4   :  { %v121_v17 = vpack.c.bf16 %v354_v16, %v352_v15 }
  0xf6   :  { %329 = vmatmul.mubr.msk.bf16.vlgmr.msra.gmra.mrb[0].mxu1 %vm145_vm2, %v121_v17 }
  0xf7   :  { %334 = vmatprep.mubr.msk.bf16.mxu1 %vm384_vm0, %v383_v1  ;;  %333 = vmatpush3.bf16.msra.mxu1 %v350_v18 }
 0x1c9   :  { %v183_v20 = vpop.f32.mrb[0].mxu1 }
 0x1ca   :  { %v184_v21 = vadd.f32 %v286_v19, %v183_v20  ;;  %v330_v22 = vpop.f32.mrb[1].mxu1 }
 0x1cb   :  { %v186_v23 = vpop.f32.mrb[2].mxu1 }
 0x1cc   :  { %v187_v24 = vadd.f32 %v286_v19, %v186_v23  ;;  %v331_v25 = vpop.f32.mrb[3].mxu1  ;;  %355 = vtanh.f32 %v184_v21 }
 0x1ce   :  { %357 = vtanh.f32 %v187_v24 }
 0x1d6   :  { %v356_v26 = vpop.eup %355 }
 0x1d8   :  { %v358_v27 = vpop.eup %357 }
 0x1d9   :  { %v192_v28 = vpack.c.bf16 %v358_v27, %v356_v26 }
 0x1db   :  { %335 = vmatmul.mubr.msk.bf16.vlgmr.msra.gmra.mrb[4].mxu1 %vm208_vm3, %v192_v28 }
 0x2ae   :  { %v246_v30 = vpop.f32.mrb[4].mxu1 }
 0x2af   :  { %v336_v31 = vpop.f32.mrb[5].mxu1  ;;  %v247_v33 = vadd.f32 %v290_v29, %v246_v30 }
 0x2b0   :  { %v249_v32 = vpop.f32.mrb[6].mxu1 }
 0x2b1   :  { %v250_v34 = vadd.f32 %v290_v29, %v249_v32  ;;  %v337_v35 = vpop.f32.mrb[7].mxu1 }
 0x2b3   :  { %v300_v36 = vpack.c.bf16 %v250_v34, %v247_v33 }
 0x2b5   :  { %301 = vst [vmem:[#allocation2] sm:$0xff] %v300_v36  }
 0x2b6   :  { %370 = shalt.err (!%p367_p4)
}
 0x2b7   :  { %s371_s21 = scalar_lea.hbm %s483_s7, 128 }
 0x2b8   :  { %p372_p5 = scmp.ne.s32.totalorder %s483_s7, %s371_s21  ;;  %p375_p6 = scmp.lt.u32.totalorder %s371_s21, %s483_s7 }
 0x2ba   :  { %p377_p7 = pnand %p375_p6, %p372_p5 }
 0x2bc   :  { %380 = shalt.err (!%p377_p7)
}
 0x2bd   :  { %s386_s26 = smov 64   ;;  %s387_s27 = smov 4  }
 0x2be   :  { %274 = dma.vmem_to_hbm [thread:$0]  %s269_s18, 128, %s483_s7, [#allocation3], %s386_s26, %s386_s26, %s387_s27  }
 0x2bf   :  { %381 = dma.done.wait [#allocation3], 128  }
 0x2c0   :  { %382 = vsyncadd [#allocation3], 4294967168 }
 0x2c1   :  { %278 = vsyncpa [#allocation3], 1 }

// kernel: tpu_custom_call.1
= control target key start
LH: loop header
LB: loop body
LE: loop exit
PB: predicated region body
PF: predicated region fallthrough
CT: control target
= control target key end

     0   :  { %v383_v1 = vmov 0.0   ;;  %vm384_vm0 = vmmov 0   ;;  %s476_s0 = inlined_call_operand.vmem [shape: bf16[16,64], index: 0, kind: input, shape index: {}]   ;;  %s477_s1 = inlined_call_operand.vmem [shape: bf16[64,32], index: 1, kind: input, shape index: {}]   ;;  %s478_s2 = inlined_call_operand.vmem [shape: f32[1,32], index: 2, kind: input, shape index: {}]   ;;  %s479_s3 = inlined_call_operand.vmem [shape: bf16[32,16], index: 3, kind: input, shape index: {}]   ;;  %s480_s4 = inlined_call_operand.vmem [shape: f32[1,16], index: 4, kind: input, shape index: {}]   ;;  %s481_s5 = inlined_call_operand.vmem [shape: bf16[16,128], index: 5, kind: input, shape index: {}]   ;;  %s482_s6 = inlined_call_operand.vmem [shape: f32[1,128], index: 6, kind: input, shape index: {}]   ;;  %s483_s7 = inlined_call_operand.hbm [shape: bf16[16,128], index: 7, kind: output, shape index: {}]  }
   0x1   :  { %v343_v0 = vld [vmem:[%s477_s1] sm:$0xff]   ;;  %312 = vmatprep.subr.bf16.mxu0 %v383_v1  ;;  %324 = vmatprep.subr.bf16.mxu1 %v383_v1  ;;  %v344_v2 = vld [vmem:[%s477_s1 + $0x8] sm:$0xff]   ;;  %v345_v3 = vld [vmem:[%s477_s1 + $0x10] sm:$0xff]  }
   0x2   :  { %313 = vmatpush3.bf16.msra.mxu0 %v343_v0  ;;  %320 = vmatprep.mubr.msk.bf16.mxu0 %vm384_vm0, %v383_v1 }
   0x3   :  { %314 = vmatprep.subr.bf16.mxu0 %v383_v1  ;;  %328 = vmatprep.mubr.msk.bf16.mxu1 %vm384_vm0, %v383_v1 }
   0x6   :  { %315 = vmatpush3.bf16.msra.mxu0 %v344_v2 }
   0x7   :  { %316 = vmatprep.subr.bf16.mxu0 %v383_v1 }
   0x8   :  { %12 = vsyncpa [#allocation3], 0  ;;  %v346_v4 = vld [vmem:[%s477_s1 + $0x18] sm:$0xff]   ;;  %v347_v5 = vld [vmem:[%s476_s0] sm:$0xff]   ;;  %vm74_vm1 = vcmask 523264   ;;  %vm145_vm2 = vcmask 261120  }
   0x9   :  { %v348_v6 = vld [vmem:[%s479_s3] sm:$0xff]   ;;  %v349_v7 = vld [vmem:[%s479_s3 + $0x8] sm:$0xff]   ;;  %vm208_vm3 = vcmask 130048  }
   0xa   :  { %317 = vmatpush3.bf16.msra.mxu0 %v345_v3  ;;  %325 = vmatpush3.bf16.msra.mxu1 %v348_v6  ;;  %v279_v8 = vld [vmem:[%s478_s2] ss:$0 sm:$0xff] }
   0xb   :  { %318 = vmatprep.subr.bf16.mxu0 %v383_v1  ;;  %326 = vmatprep.subr.bf16.mxu1 %v383_v1  ;;  %v350_v18 = vld [vmem:[%s481_s5] sm:$0xff]  }
   0xc   :  { %v286_v19 = vld [vmem:[%s480_s4] ss:$0 sm:$0xff]  ;;  %s385_s4 = smov [#allocation2]  }
   0xd   :  { %v290_v29 = vld [vmem:[%s482_s6] ss:$0 sm:$0xff]  ;;  %s268_s18 = sshll.u32 %s385_s4, 4  ;;  %s269_s18 = int_to_ptr.vmem [resolvable:$true] %s268_s18 }
   0xe   :  { %319 = vmatpush3.bf16.msra.mxu0 %v346_v4  ;;  %327 = vmatpush3.bf16.msra.mxu1 %v349_v7  ;;  %s359_s19 = scalar_lea.vmem %s269_s18, 128  ;;  %p364_p1 = scmp.lt.s32.totalorder %s269_s18, %s269_s18 }
   0xf   :  { %332 = vmatprep.subr.bf16.mxu1 %v383_v1  ;;  %p360_p0 = scmp.ne.s32.totalorder %s269_s18, %s359_s19  ;;  %p365_p2 = scmp.lt.s32.totalorder %s359_s19, %s359_s19 }
  0x11   :  { %321 = vmatmul.mubr.msk.bf16.vlgmr.msra.gmra.mrb[0].mxu0 %vm74_vm1, %v347_v5  ;;  %p366_p3 = por %p365_p2, %p364_p1 }
  0x13   :  { %p367_p4 = pnand %p366_p3, %p360_p0 }
  0xe4   :  { %v112_v9 = vpop.f32.mrb[0].mxu0 }
  0xe5   :  { %v113_v10 = vadd.f32 %v279_v8, %v112_v9  ;;  %v322_v11 = vpop.f32.mrb[1].mxu0 }
  0xe6   :  { %v115_v12 = vpop.f32.mrb[2].mxu0 }
  0xe7   :  { %v116_v13 = vadd.f32 %v279_v8, %v115_v12  ;;  %v323_v14 = vpop.f32.mrb[3].mxu0  ;;  %351 = vtanh.f32 %v113_v10 }
  0xe9   :  { %353 = vtanh.f32 %v116_v13 }
  0xf1   :  { %v352_v15 = vpop.eup %351 }
  0xf3   :  { %v354_v16 = vpop.eup %353 }
  0xf4   :  { %v121_v17 = vpack.c.bf16 %v354_v16, %v352_v15 }
  0xf6   :  { %329 = vmatmul.mubr.msk.bf16.vlgmr.msra.gmra.mrb[0].mxu1 %vm145_vm2, %v121_v17 }
  0xf7   :  { %334 = vmatprep.mubr.msk.bf16.mxu1 %vm384_vm0, %v383_v1  ;;  %333 = vmatpush3.bf16.msra.mxu1 %v350_v18 }
 0x1c9   :  { %v183_v20 = vpop.f32.mrb[0].mxu1 }
 0x1ca   :  { %v184_v21 = vadd.f32 %v286_v19, %v183_v20  ;;  %v330_v22 = vpop.f32.mrb[1].mxu1 }
 0x1cb   :  { %v186_v23 = vpop.f32.mrb[2].mxu1 }
 0x1cc   :  { %v187_v24 = vadd.f32 %v286_v19, %v186_v23  ;;  %v331_v25 = vpop.f32.mrb[3].mxu1  ;;  %355 = vtanh.f32 %v184_v21 }
 0x1ce   :  { %357 = vtanh.f32 %v187_v24 }
 0x1d6   :  { %v356_v26 = vpop.eup %355 }
 0x1d8   :  { %v358_v27 = vpop.eup %357 }
 0x1d9   :  { %v192_v28 = vpack.c.bf16 %v358_v27, %v356_v26 }
 0x1db   :  { %335 = vmatmul.mubr.msk.bf16.vlgmr.msra.gmra.mrb[4].mxu1 %vm208_vm3, %v192_v28 }
 0x2ae   :  { %v246_v30 = vpop.f32.mrb[4].mxu1 }
 0x2af   :  { %v336_v31 = vpop.f32.mrb[5].mxu1  ;;  %v247_v33 = vadd.f32 %v290_v29, %v246_v30 }
 0x2b0   :  { %v249_v32 = vpop.f32.mrb[6].mxu1 }
 0x2b1   :  { %v250_v34 = vadd.f32 %v290_v29, %v249_v32  ;;  %v337_v35 = vpop.f32.mrb[7].mxu1 }
 0x2b3   :  { %v300_v36 = vpack.c.bf16 %v250_v34, %v247_v33 }
 0x2b5   :  { %301 = vst [vmem:[#allocation2] sm:$0xff] %v300_v36  }
 0x2b6   :  { %370 = shalt.err (!%p367_p4)
}
 0x2b7   :  { %s371_s21 = scalar_lea.hbm %s483_s7, 128 }
 0x2b8   :  { %p372_p5 = scmp.ne.s32.totalorder %s483_s7, %s371_s21  ;;  %p375_p6 = scmp.lt.u32.totalorder %s371_s21, %s483_s7 }
 0x2ba   :  { %p377_p7 = pnand %p375_p6, %p372_p5 }
 0x2bc   :  { %380 = shalt.err (!%p377_p7)
}
 0x2bd   :  { %s386_s26 = smov 64   ;;  %s387_s27 = smov 4  }
 0x2be   :  { %274 = dma.vmem_to_hbm [thread:$0]  %s269_s18, 128, %s483_s7, [#allocation3], %s386_s26, %s386_s26, %s387_s27  }
 0x2bf   :  { %381 = dma.done.wait [#allocation3], 128  }
 0x2c0   :  { %382 = vsyncadd [#allocation3], 4294967168 }
 0x2c1   :  { %278 = vsyncpa [#allocation3], 1 }

</bundles_post_ra>
